<compile_context>
chip_gen: v7x
topology: tpu7x:2x2x1
jax: 0.10.0
libtpu: 0.0.40
codegen_flags: <defaults>
</compile_context>

<pallas_src>
import jax
import jax.numpy as jnp
from jax.experimental import pallas as pl
from jax.experimental.pallas import tpu as pltpu


def _round_up(a, b):
    return -(-a // b) * b


def _swish(y):
    # sigmoid = 1 / (1 + exp(-y)); exp + seed reciprocal go to the EUP slot
    # (otherwise idle), one Newton step restores full f32 accuracy on the VPU.
    d = 1.0 + jnp.exp(-y)
    r = pl.reciprocal(d, approx=True)
    r = r * (2.0 - d * r)
    return y * r


def _glu_vpu_kernel(x_ref, w_ref, b_ref, o_ref):
    """Small-C path. x_ref/o_ref: (C, T) VMEM; w_ref: (C, C) SMEM; b_ref: (1, C) SMEM."""
    x = x_ref[...].astype(jnp.float32)              # (C, T), lane-dense
    C = x_ref.shape[0]
    for o in range(C):                              # static unroll: C*C VPU FMAs
        acc = b_ref[0, o] + w_ref[o, 0] * x[0:1, :]
        for c in range(1, C):
            acc = acc + w_ref[o, c] * x[c:c + 1, :]
        o_ref[o:o + 1, :] = _swish(acc).astype(o_ref.dtype)


def _glu_mxu_kernel(x_ref, w_ref, b_ref, o_ref):
    """General path. x_ref: (C, T); w_ref: (t_co, C); b_ref: (t_co, 1); o_ref: (t_co, T)."""
    y = jnp.dot(w_ref[...], x_ref[...], preferred_element_type=jnp.float32)
    y = y + b_ref[...].astype(jnp.float32)
    o_ref[...] = _swish(y).astype(o_ref.dtype)


def _pick_spatial_tile(HW, req):
    """Return (t_hw, HW_padded). Prefers tilings that need no padding."""
    req = max(128, min(int(req), _round_up(HW, 128)))
    req -= req % 128
    if HW % 128 == 0:
        # Largest multiple of 128 that divides HW and is <= req (always exists).
        t = req
        while HW % t != 0:
            t -= 128
        return t, HW
    if HW <= req:
        # Single full-extent spatial block: legal even if HW % 128 != 0.
        return HW, HW
    # Fallback: pad the spatial axis so the 128-multiple tile divides it.
    return req, _round_up(HW, req)


def glu_forward(x_nchw, weight, bias, *, t_hw=512, t_co=512):
    """x_nchw: (N, C, H, W); weight: (C, C) in nn.Linear (out, in) layout; bias: (C,).

    bf16 inputs are supported transparently (accumulation stays f32).
    """
    N, C, H, W = x_nchw.shape
    HW = H * W
    out_dtype = x_nchw.dtype
    itemsize = jnp.dtype(x_nchw.dtype).itemsize

    # Free view: NCHW -> (N, C, H*W). No transposes anywhere in the wrapper.
    x3 = x_nchw.reshape(N, C, HW)

    # Small-C tiles carry very little data per row -> use bigger spatial tiles
    # to amortize per-grid-step overhead.
    req_hw = t_hw if C > 8 else max(int(t_hw), 4096)
    t_hw, HW_p = _pick_spatial_tile(HW, req_hw)
    if HW_p != HW:
        x3 = jnp.pad(x3, ((0, 0), (0, 0), (0, HW_p - HW)))
    n_s = HW_p // t_hw

    if C <= 8:
        # Tiny channel count: skip the MXU entirely, weight/bias in SMEM
        # (SMEM scalars are 32-bit -> keep them f32).
        w_s = weight.astype(jnp.float32)
        b_s = bias.astype(jnp.float32).reshape(1, C)
        grid = (N, n_s)
        kernel = _glu_vpu_kernel
        in_specs = [
            pl.BlockSpec((None, C, t_hw), lambda n, s: (n, 0, s)),
            pl.BlockSpec(memory_space=pltpu.MemorySpace.SMEM),   # weight (C, C)
            pl.BlockSpec(memory_space=pltpu.MemorySpace.SMEM),   # bias   (1, C)
        ]
        out_specs = pl.BlockSpec((None, C, t_hw), lambda n, s: (n, 0, s))
        args = (x3, w_s, b_s)
        dims = ("parallel", "parallel")
        vmem_est = 2 * 2 * C * t_hw * itemsize                   # in+out, 2x buffered
    else:
        # MXU path, tiled over output channels so the resident weight stays
        # bounded (important on v7x's 64 MiB VMEM for large C).
        w_m = weight.astype(out_dtype) if out_dtype == jnp.bfloat16 else weight
        t_co = min(int(t_co), C)
        if C % t_co != 0:
            for cand in (512, 256, 128, 64, 32, 16, 8):
                if cand <= t_co and C % cand == 0:
                    t_co = cand
                    break
            else:
                t_co = C
        n_co = C // t_co
        grid = (N, n_co, n_s)
        kernel = _glu_mxu_kernel
        in_specs = [
            pl.BlockSpec((None, C, t_hw), lambda n, co, s: (n, 0, s)),
            pl.BlockSpec((t_co, C), lambda n, co, s: (co, 0)),
            pl.BlockSpec((t_co, 1), lambda n, co, s: (co, 0)),
        ]
        out_specs = pl.BlockSpec((None, t_co, t_hw), lambda n, co, s: (n, co, s))
        args = (x3, w_m, bias.astype(jnp.float32).reshape(C, 1))
        dims = ("parallel", "parallel", "parallel")
        vmem_est = 2 * itemsize * (C * t_hw + t_co * C + t_co + t_co * t_hw)

    # Scoped-VMEM budget: enough for the double-buffered tiles, capped so the
    # same code fits v7x (64 MiB physical) and lifts v5e's 16 MiB default.
    vmem_limit = int(min(48 * 2 ** 20, max(32 * 2 ** 20, 2 * vmem_est)))

    cost = pl.CostEstimate(
        flops=2 * N * C * C * HW_p + 4 * N * C * HW_p,
        transcendentals=N * C * HW_p,
        bytes_accessed=(x3.size + weight.size + bias.size) * itemsize
        + N * C * HW_p * jnp.dtype(out_dtype).itemsize,
    )

    out3 = pl.pallas_call(
        kernel,
        out_shape=jax.ShapeDtypeStruct((N, C, HW_p), out_dtype),
        grid_spec=pltpu.PrefetchScalarGridSpec(
            num_scalar_prefetch=0,
            grid=grid,
            in_specs=in_specs,
            out_specs=out_specs,
        ),
        compiler_params=pltpu.CompilerParams(
            dimension_semantics=dims,
            vmem_limit_bytes=vmem_limit,
        ),
        cost_estimate=cost,
    )(*args)

    if HW_p != HW:
        out3 = out3[:, :, :HW]
    return out3.reshape(N, C, H, W)


if __name__ == "__main__":
    # Small shapes consistent with the module: batch=2, channels=4, spatial=16x16.
    N, C, H, W = 2, 4, 16, 16
    key = jax.random.PRNGKey(0)
    kx, kw, kb = jax.random.split(key, 3)

    x = jax.random.normal(kx, (N, C, H, W), dtype=jnp.float32)
    # nn.Linear(in_size, in_size)-style init: U(-1/sqrt(C), 1/sqrt(C))
    bound = 1.0 / float(C) ** 0.5
    weight = jax.random.uniform(kw, (C, C), minval=-bound, maxval=bound,
                                dtype=jnp.float32)
    bias = jax.random.uniform(kb, (C,), minval=-bound, maxval=bound,
                              dtype=jnp.float32)

    out = glu_forward(x, weight, bias)
    jax.block_until_ready(out)

    # Pure-JAX reference (same math as the PyTorch forward).
    lin = jnp.einsum("nchw,oc->nohw", x, weight) + bias[None, :, None, None]
    ref = lin * jax.nn.sigmoid(lin)
    assert out.shape == (N, C, H, W)
    err = float(jnp.max(jnp.abs(out - ref)))
    assert jnp.allclose(out, ref, atol=1e-4, rtol=1e-4), err

    print("KERNEL_OK")
</pallas_src>

<mosaic_0001>
module attributes {stable_mosaic.version = 11 : i64} {
  func.func @_glu_vpu_kernel(%arg0: i32, %arg1: i32, %arg2: memref<1x4x256xf32, #tpu.memory_space<vmem>>, %arg3: memref<4x4xf32, #tpu.memory_space<smem>>, %arg4: memref<1x4xf32, #tpu.memory_space<smem>>, %arg5: memref<1x4x256xf32, #tpu.memory_space<vmem>>) attributes {dimension_semantics = [#tpu.dimension_semantics<parallel>, #tpu.dimension_semantics<parallel>], iteration_bounds = array<i64: 2, 1>, scalar_prefetch = 0 : i64, scratch_operands = 0 : i64, tpu.core_type = #tpu.core_type<tc>, window_params = [{transform_indices = @transform_0, window_bounds = array<i64: 1, 4, 256>}, {transform_indices = @transform_1, window_bounds = array<i64: 4, 4>}, {transform_indices = @transform_2, window_bounds = array<i64: 1, 4>}, {transform_indices = @transform_3, window_bounds = array<i64: 1, 4, 256>}]} {
    %c0 = arith.constant 0 : index
    %c0_0 = arith.constant 0 : index
    %c0_1 = arith.constant 0 : index
    %0 = vector.load %arg2[%c0, %c0_0, %c0_1] : memref<1x4x256xf32, #tpu.memory_space<vmem>>, vector<1x4x256xf32>
    %1 = vector.shape_cast %0 : vector<1x4x256xf32> to vector<4x256xf32>
    %c0_2 = arith.constant 0 : index
    %c0_3 = arith.constant 0 : index
    %2 = memref.load %arg4[%c0_2, %c0_3] : memref<1x4xf32, #tpu.memory_space<smem>>
    %c0_4 = arith.constant 0 : index
    %c0_5 = arith.constant 0 : index
    %3 = memref.load %arg3[%c0_4, %c0_5] : memref<4x4xf32, #tpu.memory_space<smem>>
    %4 = vector.extract_strided_slice %1 {offsets = [0, 0], sizes = [1, 256], strides = [1, 1]} : vector<4x256xf32> to vector<1x256xf32>
    %5 = vector.broadcast %3 : f32 to vector<1x256xf32>
    %6 = arith.mulf %5, %4 : vector<1x256xf32>
    %7 = vector.broadcast %2 : f32 to vector<1x256xf32>
    %8 = arith.addf %7, %6 : vector<1x256xf32>
    %c0_6 = arith.constant 0 : index
    %c1 = arith.constant 1 : index
    %9 = memref.load %arg3[%c0_6, %c1] : memref<4x4xf32, #tpu.memory_space<smem>>
    %10 = vector.extract_strided_slice %1 {offsets = [1, 0], sizes = [1, 256], strides = [1, 1]} : vector<4x256xf32> to vector<1x256xf32>
    %11 = vector.broadcast %9 : f32 to vector<1x256xf32>
    %12 = arith.mulf %11, %10 : vector<1x256xf32>
    %13 = arith.addf %8, %12 : vector<1x256xf32>
    %c0_7 = arith.constant 0 : index
    %c2 = arith.constant 2 : index
    %14 = memref.load %arg3[%c0_7, %c2] : memref<4x4xf32, #tpu.memory_space<smem>>
    %15 = vector.extract_strided_slice %1 {offsets = [2, 0], sizes = [1, 256], strides = [1, 1]} : vector<4x256xf32> to vector<1x256xf32>
    %16 = vector.broadcast %14 : f32 to vector<1x256xf32>
    %17 = arith.mulf %16, %15 : vector<1x256xf32>
    %18 = arith.addf %13, %17 : vector<1x256xf32>
    %c0_8 = arith.constant 0 : index
    %c3 = arith.constant 3 : index
    %19 = memref.load %arg3[%c0_8, %c3] : memref<4x4xf32, #tpu.memory_space<smem>>
    %20 = vector.extract_strided_slice %1 {offsets = [3, 0], sizes = [1, 256], strides = [1, 1]} : vector<4x256xf32> to vector<1x256xf32>
    %21 = vector.broadcast %19 : f32 to vector<1x256xf32>
    %22 = arith.mulf %21, %20 : vector<1x256xf32>
    %23 = arith.addf %18, %22 : vector<1x256xf32>
    %cst = arith.constant 0.000000e+00 : f32
    %24 = vector.broadcast %cst : f32 to vector<1x256xf32>
    %25 = arith.subf %24, %23 : vector<1x256xf32>
    %26 = math.exp %25 : vector<1x256xf32>
    %cst_9 = arith.constant 1.000000e+00 : f32
    %27 = vector.broadcast %cst_9 : f32 to vector<1x256xf32>
    %28 = arith.addf %27, %26 : vector<1x256xf32>
    %29 = tpu.reciprocal %28 {approx = true} : vector<1x256xf32> -> vector<1x256xf32>
    %30 = arith.mulf %28, %29 : vector<1x256xf32>
    %cst_10 = arith.constant 2.000000e+00 : f32
    %31 = vector.broadcast %cst_10 : f32 to vector<1x256xf32>
    %32 = arith.subf %31, %30 : vector<1x256xf32>
    %33 = arith.mulf %29, %32 : vector<1x256xf32>
    %34 = arith.mulf %23, %33 : vector<1x256xf32>
    %c0_11 = arith.constant 0 : index
    %c0_12 = arith.constant 0 : index
    %c0_13 = arith.constant 0 : index
    %35 = vector.load %arg5[%c0_11, %c0_12, %c0_13] : memref<1x4x256xf32, #tpu.memory_space<vmem>>, vector<1x1x256xf32>
    %36 = vector.shape_cast %35 : vector<1x1x256xf32> to vector<1x256xf32>
    %37 = vector.shape_cast %34 : vector<1x256xf32> to vector<1x1x256xf32>
    tpu.vector_store %arg5[%c0_11, %c0_12, %c0_13], %37 {strides = array<i32>} : memref<1x4x256xf32, #tpu.memory_space<vmem>>, vector<1x1x256xf32>,
    %c0_14 = arith.constant 0 : index
    %c1_15 = arith.constant 1 : index
    %38 = memref.load %arg4[%c0_14, %c1_15] : memref<1x4xf32, #tpu.memory_space<smem>>
    %c1_16 = arith.constant 1 : index
    %c0_17 = arith.constant 0 : index
    %39 = memref.load %arg3[%c1_16, %c0_17] : memref<4x4xf32, #tpu.memory_space<smem>>
    %40 = vector.extract_strided_slice %1 {offsets = [0, 0], sizes = [1, 256], strides = [1, 1]} : vector<4x256xf32> to vector<1x256xf32>
    %41 = vector.broadcast %39 : f32 to vector<1x256xf32>
    %42 = arith.mulf %41, %40 : vector<1x256xf32>
    %43 = vector.broadcast %38 : f32 to vector<1x256xf32>
    %44 = arith.addf %43, %42 : vector<1x256xf32>
    %c1_18 = arith.constant 1 : index
    %c1_19 = arith.constant 1 : index
    %45 = memref.load %arg3[%c1_18, %c1_19] : memref<4x4xf32, #tpu.memory_space<smem>>
    %46 = vector.extract_strided_slice %1 {offsets = [1, 0], sizes = [1, 256], strides = [1, 1]} : vector<4x256xf32> to vector<1x256xf32>
    %47 = vector.broadcast %45 : f32 to vector<1x256xf32>
    %48 = arith.mulf %47, %46 : vector<1x256xf32>
    %49 = arith.addf %44, %48 : vector<1x256xf32>
    %c1_20 = arith.constant 1 : index
    %c2_21 = arith.constant 2 : index
    %50 = memref.load %arg3[%c1_20, %c2_21] : memref<4x4xf32, #tpu.memory_space<smem>>
    %51 = vector.extract_strided_slice %1 {offsets = [2, 0], sizes = [1, 256], strides = [1, 1]} : vector<4x256xf32> to vector<1x256xf32>
    %52 = vector.broadcast %50 : f32 to vector<1x256xf32>
    %53 = arith.mulf %52, %51 : vector<1x256xf32>
    %54 = arith.addf %49, %53 : vector<1x256xf32>
    %c1_22 = arith.constant 1 : index
    %c3_23 = arith.constant 3 : index
    %55 = memref.load %arg3[%c1_22, %c3_23] : memref<4x4xf32, #tpu.memory_space<smem>>
    %56 = vector.extract_strided_slice %1 {offsets = [3, 0], sizes = [1, 256], strides = [1, 1]} : vector<4x256xf32> to vector<1x256xf32>
    %57 = vector.broadcast %55 : f32 to vector<1x256xf32>
    %58 = arith.mulf %57, %56 : vector<1x256xf32>
    %59 = arith.addf %54, %58 : vector<1x256xf32>
    %cst_24 = arith.constant 0.000000e+00 : f32
    %60 = vector.broadcast %cst_24 : f32 to vector<1x256xf32>
    %61 = arith.subf %60, %59 : vector<1x256xf32>
    %62 = math.exp %61 : vector<1x256xf32>
    %cst_25 = arith.constant 1.000000e+00 : f32
    %63 = vector.broadcast %cst_25 : f32 to vector<1x256xf32>
    %64 = arith.addf %63, %62 : vector<1x256xf32>
    %65 = tpu.reciprocal %64 {approx = true} : vector<1x256xf32> -> vector<1x256xf32>
    %66 = arith.mulf %64, %65 : vector<1x256xf32>
    %cst_26 = arith.constant 2.000000e+00 : f32
    %67 = vector.broadcast %cst_26 : f32 to vector<1x256xf32>
    %68 = arith.subf %67, %66 : vector<1x256xf32>
    %69 = arith.mulf %65, %68 : vector<1x256xf32>
    %70 = arith.mulf %59, %69 : vector<1x256xf32>
    %c0_27 = arith.constant 0 : index
    %c1_28 = arith.constant 1 : index
    %c0_29 = arith.constant 0 : index
    %71 = vector.load %arg5[%c0_27, %c1_28, %c0_29] : memref<1x4x256xf32, #tpu.memory_space<vmem>>, vector<1x1x256xf32>
    %72 = vector.shape_cast %71 : vector<1x1x256xf32> to vector<1x256xf32>
    %73 = vector.shape_cast %70 : vector<1x256xf32> to vector<1x1x256xf32>
    tpu.vector_store %arg5[%c0_27, %c1_28, %c0_29], %73 {strides = array<i32>} : memref<1x4x256xf32, #tpu.memory_space<vmem>>, vector<1x1x256xf32>,
    %c0_30 = arith.constant 0 : index
    %c2_31 = arith.constant 2 : index
    %74 = memref.load %arg4[%c0_30, %c2_31] : memref<1x4xf32, #tpu.memory_space<smem>>
    %c2_32 = arith.constant 2 : index
    %c0_33 = arith.constant 0 : index
    %75 = memref.load %arg3[%c2_32, %c0_33] : memref<4x4xf32, #tpu.memory_space<smem>>
    %76 = vector.extract_strided_slice %1 {offsets = [0, 0], sizes = [1, 256], strides = [1, 1]} : vector<4x256xf32> to vector<1x256xf32>
    %77 = vector.broadcast %75 : f32 to vector<1x256xf32>
    %78 = arith.mulf %77, %76 : vector<1x256xf32>
    %79 = vector.broadcast %74 : f32 to vector<1x256xf32>
    %80 = arith.addf %79, %78 : vector<1x256xf32>
    %c2_34 = arith.constant 2 : index
    %c1_35 = arith.constant 1 : index
    %81 = memref.load %arg3[%c2_34, %c1_35] : memref<4x4xf32, #tpu.memory_space<smem>>
    %82 = vector.extract_strided_slice %1 {offsets = [1, 0], sizes = [1, 256], strides = [1, 1]} : vector<4x256xf32> to vector<1x256xf32>
    %83 = vector.broadcast %81 : f32 to vector<1x256xf32>
    %84 = arith.mulf %83, %82 : vector<1x256xf32>
    %85 = arith.addf %80, %84 : vector<1x256xf32>
    %c2_36 = arith.constant 2 : index
    %c2_37 = arith.constant 2 : index
    %86 = memref.load %arg3[%c2_36, %c2_37] : memref<4x4xf32, #tpu.memory_space<smem>>
    %87 = vector.extract_strided_slice %1 {offsets = [2, 0], sizes = [1, 256], strides = [1, 1]} : vector<4x256xf32> to vector<1x256xf32>
    %88 = vector.broadcast %86 : f32 to vector<1x256xf32>
    %89 = arith.mulf %88, %87 : vector<1x256xf32>
    %90 = arith.addf %85, %89 : vector<1x256xf32>
    %c2_38 = arith.constant 2 : index
    %c3_39 = arith.constant 3 : index
    %91 = memref.load %arg3[%c2_38, %c3_39] : memref<4x4xf32, #tpu.memory_space<smem>>
    %92 = vector.extract_strided_slice %1 {offsets = [3, 0], sizes = [1, 256], strides = [1, 1]} : vector<4x256xf32> to vector<1x256xf32>
    %93 = vector.broadcast %91 : f32 to vector<1x256xf32>
    %94 = arith.mulf %93, %92 : vector<1x256xf32>
    %95 = arith.addf %90, %94 : vector<1x256xf32>
    %cst_40 = arith.constant 0.000000e+00 : f32
    %96 = vector.broadcast %cst_40 : f32 to vector<1x256xf32>
    %97 = arith.subf %96, %95 : vector<1x256xf32>
    %98 = math.exp %97 : vector<1x256xf32>
    %cst_41 = arith.constant 1.000000e+00 : f32
    %99 = vector.broadcast %cst_41 : f32 to vector<1x256xf32>
    %100 = arith.addf %99, %98 : vector<1x256xf32>
    %101 = tpu.reciprocal %100 {approx = true} : vector<1x256xf32> -> vector<1x256xf32>
    %102 = arith.mulf %100, %101 : vector<1x256xf32>
    %cst_42 = arith.constant 2.000000e+00 : f32
    %103 = vector.broadcast %cst_42 : f32 to vector<1x256xf32>
    %104 = arith.subf %103, %102 : vector<1x256xf32>
    %105 = arith.mulf %101, %104 : vector<1x256xf32>
    %106 = arith.mulf %95, %105 : vector<1x256xf32>
    %c0_43 = arith.constant 0 : index
    %c2_44 = arith.constant 2 : index
    %c0_45 = arith.constant 0 : index
    %107 = vector.load %arg5[%c0_43, %c2_44, %c0_45] : memref<1x4x256xf32, #tpu.memory_space<vmem>>, vector<1x1x256xf32>
    %108 = vector.shape_cast %107 : vector<1x1x256xf32> to vector<1x256xf32>
    %109 = vector.shape_cast %106 : vector<1x256xf32> to vector<1x1x256xf32>
    tpu.vector_store %arg5[%c0_43, %c2_44, %c0_45], %109 {strides = array<i32>} : memref<1x4x256xf32, #tpu.memory_space<vmem>>, vector<1x1x256xf32>,
    %c0_46 = arith.constant 0 : index
    %c3_47 = arith.constant 3 : index
    %110 = memref.load %arg4[%c0_46, %c3_47] : memref<1x4xf32, #tpu.memory_space<smem>>
    %c3_48 = arith.constant 3 : index
    %c0_49 = arith.constant 0 : index
    %111 = memref.load %arg3[%c3_48, %c0_49] : memref<4x4xf32, #tpu.memory_space<smem>>
    %112 = vector.extract_strided_slice %1 {offsets = [0, 0], sizes = [1, 256], strides = [1, 1]} : vector<4x256xf32> to vector<1x256xf32>
    %113 = vector.broadcast %111 : f32 to vector<1x256xf32>
    %114 = arith.mulf %113, %112 : vector<1x256xf32>
    %115 = vector.broadcast %110 : f32 to vector<1x256xf32>
    %116 = arith.addf %115, %114 : vector<1x256xf32>
    %c3_50 = arith.constant 3 : index
    %c1_51 = arith.constant 1 : index
    %117 = memref.load %arg3[%c3_50, %c1_51] : memref<4x4xf32, #tpu.memory_space<smem>>
    %118 = vector.extract_strided_slice %1 {offsets = [1, 0], sizes = [1, 256], strides = [1, 1]} : vector<4x256xf32> to vector<1x256xf32>
    %119 = vector.broadcast %117 : f32 to vector<1x256xf32>
    %120 = arith.mulf %119, %118 : vector<1x256xf32>
    %121 = arith.addf %116, %120 : vector<1x256xf32>
    %c3_52 = arith.constant 3 : index
    %c2_53 = arith.constant 2 : index
    %122 = memref.load %arg3[%c3_52, %c2_53] : memref<4x4xf32, #tpu.memory_space<smem>>
    %123 = vector.extract_strided_slice %1 {offsets = [2, 0], sizes = [1, 256], strides = [1, 1]} : vector<4x256xf32> to vector<1x256xf32>
    %124 = vector.broadcast %122 : f32 to vector<1x256xf32>
    %125 = arith.mulf %124, %123 : vector<1x256xf32>
    %126 = arith.addf %121, %125 : vector<1x256xf32>
    %c3_54 = arith.constant 3 : index
    %c3_55 = arith.constant 3 : index
    %127 = memref.load %arg3[%c3_54, %c3_55] : memref<4x4xf32, #tpu.memory_space<smem>>
    %128 = vector.extract_strided_slice %1 {offsets = [3, 0], sizes = [1, 256], strides = [1, 1]} : vector<4x256xf32> to vector<1x256xf32>
    %129 = vector.broadcast %127 : f32 to vector<1x256xf32>
    %130 = arith.mulf %129, %128 : vector<1x256xf32>
    %131 = arith.addf %126, %130 : vector<1x256xf32>
    %cst_56 = arith.constant 0.000000e+00 : f32
    %132 = vector.broadcast %cst_56 : f32 to vector<1x256xf32>
    %133 = arith.subf %132, %131 : vector<1x256xf32>
    %134 = math.exp %133 : vector<1x256xf32>
    %cst_57 = arith.constant 1.000000e+00 : f32
    %135 = vector.broadcast %cst_57 : f32 to vector<1x256xf32>
    %136 = arith.addf %135, %134 : vector<1x256xf32>
    %137 = tpu.reciprocal %136 {approx = true} : vector<1x256xf32> -> vector<1x256xf32>
    %138 = arith.mulf %136, %137 : vector<1x256xf32>
    %cst_58 = arith.constant 2.000000e+00 : f32
    %139 = vector.broadcast %cst_58 : f32 to vector<1x256xf32>
    %140 = arith.subf %139, %138 : vector<1x256xf32>
    %141 = arith.mulf %137, %140 : vector<1x256xf32>
    %142 = arith.mulf %131, %141 : vector<1x256xf32>
    %c0_59 = arith.constant 0 : index
    %c3_60 = arith.constant 3 : index
    %c0_61 = arith.constant 0 : index
    %143 = vector.load %arg5[%c0_59, %c3_60, %c0_61] : memref<1x4x256xf32, #tpu.memory_space<vmem>>, vector<1x1x256xf32>
    %144 = vector.shape_cast %143 : vector<1x1x256xf32> to vector<1x256xf32>
    %145 = vector.shape_cast %142 : vector<1x256xf32> to vector<1x1x256xf32>
    tpu.vector_store %arg5[%c0_59, %c3_60, %c0_61], %145 {strides = array<i32>} : memref<1x4x256xf32, #tpu.memory_space<vmem>>, vector<1x1x256xf32>,
    return
  }
  func.func @transform_0(%arg0: i32, %arg1: i32) -> (i32, i32, i32) {
    %c0_i32 = arith.constant 0 : i32
    %c0_i32_0 = arith.constant 0 : i32
    return %arg0, %c0_i32, %arg1 : i32, i32, i32
  }
  func.func @transform_1(%arg0: i32, %arg1: i32) -> (i32, i32) {
    %c0_i32 = arith.constant 0 : i32
    %c0_i32_0 = arith.constant 0 : i32
    %c0_i32_1 = arith.constant 0 : i32
    return %c0_i32, %c0_i32_0 : i32, i32
  }
  func.func @transform_2(%arg0: i32, %arg1: i32) -> (i32, i32) {
    %c0_i32 = arith.constant 0 : i32
    %c0_i32_0 = arith.constant 0 : i32
    %c0_i32_1 = arith.constant 0 : i32
    return %c0_i32, %c0_i32_0 : i32, i32
  }
  func.func @transform_3(%arg0: i32, %arg1: i32) -> (i32, i32, i32) {
    %c0_i32 = arith.constant 0 : i32
    %c0_i32_0 = arith.constant 0 : i32
    return %arg0, %c0_i32, %arg1 : i32, i32, i32
  }
}

</mosaic_0001>

<bundles_post_ra>
// kernel: tpu_custom_call.1
= control target key start
LH: loop header
LB: loop body
LE: loop exit
PB: predicated region body
PF: predicated region fallthrough
CT: control target
= control target key end

     0   :  { %8 = vsyncpa [#allocation3], 0  ;;  %s1218_s0 = inlined_call_operand.hbm [shape: f32[2,4,256], index: 0, kind: input, shape index: {}]   ;;  %s1219_s1 = inlined_call_operand.hbm [shape: f32[4,4], index: 1, kind: input, shape index: {}]   ;;  %s1220_s2 = inlined_call_operand.vmem [shape: f32[1,4], index: 2, kind: input, shape index: {}]   ;;  %s1221_s3 = inlined_call_operand.hbm [shape: f32[2,4,256], index: 3, kind: output, shape index: {}]  }
   0x1   :  { %10 = vsyncpa [#allocation3 + $0x1], 0 }
   0x2   :  { %11 = vsyncpa [#allocation5], 0 }
   0x3   :  { %12 = vsyncpa [#allocation6], 0 }
   0x4   :  { %13 = vsyncpa [#allocation4], 0 }
   0x5   :  { %15 = vsyncpa [#allocation4 + $0x1], 0  ;;  %s918_s12 = smov 0   ;;  %s920_s13 = smov 0  }
   0x6   :  { %s922_s14 = smov 0   ;;  %s924_s15 = smov 0  }
   0x7   :  { %s926_s16 = smov 0   ;;  %s928_s17 = smov 0  }
   0x8 LB: > { %s589_s18 = sadd.s32 4294967295, %s891_s17   ;;  %s590_s19 = sadd.s32 4294967294, %s891_s17   ;;  %s891_s17 = sphi %s928_s17, %s21_s17   ;;  %s887_s16 = sphi %s926_s16, %s1246_s16   ;;  %s883_s15 = sphi %s924_s15, %s1245_s15   ;;  %s879_s14 = sphi %s922_s14, %s1244_s14   ;;  %s875_s13 = sphi %s920_s13, %s1243_s13   ;;  %s871_s12 = sphi %s918_s12, %s1242_s12  }
   0x9   : > { %p55_p0 = scmp.ne.s32.totalorder %s875_s13, %s871_s12  ;;  %p952_p1 = scmp.eq.s32.totalorder %s589_s18, 0 }
   0xa   : > { %p956_p2 = scmp.eq.s32.totalorder %s589_s18, 1  ;;  %p129_p3 = scmp.eq.s32.totalorder %s590_s19, 1 }
   0xb   : > { %s1226_s20 = scalar_select %p952_p1, 1, 0 }
   0xc   : > { %p962_p4 = por %p952_p1, %p55_p0  ;;  %p591_p5 = scmp.ge.s32.totalorder %s891_s17, 1 }
   0xd   : > { %p967_p6 = por %p129_p3, %p55_p0  ;;  %p136_p7 = scmp.lt.s32.totalorder %s891_s17, 3 }
   0xe   : > { %s1228_s22 = scalar_select %p962_p4, 1, 0 }
   0xf   : > { %s1229_s23 = scalar_select %p967_p6, 1, 0 }
  0x10   : > { %p972_p8 = pnand %p591_p5, %p136_p7  ;;  %s158_s27 = sshll.u32 %s1220_s2, 4  ;;  %s159_s27 = int_to_ptr.vmem [resolvable:$true] %s158_s27 }
  0x11   : > { %s33_s29 = sadd.s32 1, %s887_s16  ;;  %s743_s6 = scalar_lea.hbm %s1219_s1, 64 }
  0x12   : > { %s1230_s24 = scalar_select %p972_p8, 1, 0 }
  0x13   : > { %p655_p10 = pneg %p972_p8  ;;  %p989_p12 = scmp.ge.s32.totalorder %s33_s29, 2 }
  0x14   : > { %p744_p13 = scmp.ne.s32.totalorder %s1219_s1, %s743_s6  ;;  %p750_p7 = scmp.lt.u32.totalorder %s743_s6, %s1219_s1 }
  0x15   : > { %p984_p11 = pnand %p655_p10, %p952_p1 }
  0x17   : > { %p745_p0 = pneg %p984_p11 }
  0x19   : > { %p746_p3 = pnand %p745_p0, %p744_p13 }
  0x1b   : > { %p747_p5 = pneg %p746_p3 }
  0x1d   : > { %p752_p10 = pnand %p750_p7, %p747_p5 }
  0x1f   : > { %755 = shalt.err (!%p752_p10)
}
  0x20   : > { %s893_s11 = smov [#allocation7]   ;;  %s756_s25 = scalar_lea.vmem %s159_s27, 16 }
  0x21   : > { %658 = dma.hbm_to_smem (!%p984_p11), %s1219_s1, 64, %s893_s11, [#allocation5]  }
  0x22   : > { %p757_p9 = scmp.ne.s32.totalorder %s159_s27, %s756_s25  ;;  %p764_p4 = scmp.lt.s32.totalorder %s159_s27, %s159_s27 }
  0x23   : > { %p765_p13 = scmp.lt.s32.totalorder %s756_s25, %s756_s25 }
  0x24   : > { %p759_p6 = pnand %p757_p9, %p745_p0 }
  0x25   : > { %p766_p3 = por %p765_p13, %p764_p4 }
  0x26   : > { %p760_p1 = pneg %p759_p6 }
  0x28   : > { %p767_p8 = pnand %p766_p3, %p760_p1 }
  0x2a   : > { %770 = shalt.err (!%p767_p8)
}
  0x2b   : > { %s894_s26 = smov [#allocation8]   ;;  %s1248_s29 = smov (%p989_p12, %s33_s29), 0 }
  0x2c   : > { %661 = dma.vmem_to_smem (!%p984_p11), %s159_s27, 16, %s894_s26, [#allocation6]  }
  0x2d   : > { %s42_s4 = sadd.s32 1, %s879_s14  ;;  %p49_p1 = scmp.ne.s32.totalorder %s879_s14, %s875_s13 }
  0x2e   : > { %s37_s5 = ssub.s32 %s887_s16, %s1248_s29  ;;  %p50_p4 = scmp.eq.s32.totalorder %s891_s17, 0 }
  0x2f   : > { %p40_p6 = scmp.eq.s32.totalorder %s37_s5, 0  ;;  %p1023_p8 = por %p956_p2, %p49_p1 }
  0x30   : > { %p51_p9 = por %p50_p4, %p49_p1  ;;  %p672_p0 = scmp.lt.s32.totalorder %s891_s17, 2 }
  0x31   : > { %s1029_s6 = scalar_select %p40_p6, %s879_s14, %s42_s4  }
  0x32   : > { %s169_s7 = sand.u32 1, %s879_s14   ;;  %s641_s27 = sshll.u32 %s887_s16, 7 }
  0x33   : > { %s595_s30 = sshll.u32 %s169_s7, 3  ;;  %s1036_s10 = scalar_lea.hbm %s1218_s0, %s641_s27 }
  0x34   : > { %s173_s21 = scalar_lea.vmem [#allocation2], %s595_s30  ;;  %p1038_p2 = pnand %p672_p0, %p51_p9 }
  0x35   : > { %s183_s11 = sshll.u32 %s173_s21, 4  ;;  %s170_s19 = scalar_lea.sflag [#allocation3], %s169_s7  ;;  %s1042_s11 = int_to_ptr.vmem [resolvable:$true] %s183_s11 }
  0x36   : > { %s771_s25 = scalar_lea.hbm %s1036_s10, 128  ;;  %p773_p12 = pneg %p1038_p2 }
  0x37   : > { %p772_p11 = scmp.ne.s32.totalorder %s1036_s10, %s771_s25  ;;  %s776_s5 = scalar_lea.hbm %s1218_s0, 256 }
  0x38   : > { %p777_p10 = scmp.lt.u32.totalorder %s1036_s10, %s1218_s0  ;;  %p778_p13 = scmp.lt.u32.totalorder %s776_s5, %s771_s25 }
  0x39   : > { %p774_p5 = pnand %p773_p12, %p772_p11  ;;  %p780_p1 = scmp.lt.u32.totalorder %s771_s25, %s1036_s10 }
  0x3a   : > { %p779_p3 = por %p778_p13, %p777_p10 }
  0x3b   : > { %p775_p7 = pneg %p774_p5 }
  0x3c   : > { %p781_p4 = por %p780_p1, %p779_p3 }
  0x3e   : > { %p782_p6 = pnand %p781_p4, %p775_p7 }
  0x40   : > { %785 = shalt.err (!%p782_p6)
}
  0x41   : > { %s786_s7 = scalar_lea.vmem %s1042_s11, 128  ;;  %s895_s8 = smov [#allocation2]  }
  0x42   : > { %p787_p9 = scmp.ne.s32.totalorder %s1042_s11, %s786_s7  ;;  %s791_s9 = sshll.u32 %s895_s8, 4  ;;  %s792_s9 = int_to_ptr.vmem [resolvable:$false] %s791_s9 }
  0x43   : > { %s793_s21 = scalar_lea.vmem %s792_s9, 256  ;;  %p794_p5 = scmp.lt.s32.totalorder %s1042_s11, %s792_s9 }
  0x44   : > { %p789_p0 = pnand %p787_p9, %p773_p12  ;;  %p795_p10 = scmp.lt.s32.totalorder %s793_s21, %s786_s7 }
  0x46   : > { %p790_p11 = pneg %p789_p0  ;;  %p796_p13 = por %p795_p10, %p794_p5 }
  0x48   : > { %p797_p3 = pnand %p796_p13, %p790_p11 }
  0x4a   : > { %800 = shalt.err (!%p797_p3)
}
  0x4b   : > { %665 = dma.hbm_to_vmem [thread:$0]  (!%p1038_p2), %s1036_s10, 128, %s1042_s11, %s170_s19  }
  0x4c   : > { %p1235_p7 = scmp.ne.s32.totalorder %s1230_s24, 0 }
  0x4d   : > { %s1072_s25 = sand.u32 (!%p1235_p7), 1, %s875_s13   ;;  %p1236_p12 = scmp.ne.s32.totalorder (!%p1235_p7), %s1228_s22, 0 }
  0x4e   : > { %192 = sbr.rel (%p1235_p7) target bundleno = 176 (0xb0), region = 32  ;;  %s599_s26 = sshll.u32 (!%p1235_p7), %s1072_s25, 3 }
  0x4f   : > { %s195_s4 = scalar_lea.sflag (!%p1235_p7), [#allocation3], %s1072_s25  ;;  %s198_s5 = scalar_lea.vmem (!%p1235_p7), [#allocation2], %s599_s26 }
  0x55   : > { %854 = dma.done.wait (%p1236_p12), %s195_s4, 128  }
  0x56   : > { %856 = vsyncadd (%p1236_p12), %s195_s4, 4294967168  ;;  %p1237_p2 = scmp.ne.s32.totalorder %s1226_s20, 0 }
  0x58   : > { %858 = dma.done.wait (%p1237_p2), [#allocation5], 64  }
  0x59   : > { %860 = vsyncadd (%p1237_p2), [#allocation5], 4294967232 }
  0x5a   : > { %862 = dma.done.wait (%p1237_p2), [#allocation6], 16  }
  0x5b   : > { %864 = vsyncadd (%p1237_p2), [#allocation6], 4294967280 }
  0x5c   : > { %211 = sfence }
  0x5d   : > { %s233_s24 = sld [smem:[#allocation8]]  ;;  %s603_s11 = sld [smem:[#allocation7 + $0x1]]  ;;  %v1094_v0 = vld [vmem:[%s198_s5] sm:$0xff] }
  0x5e   : > { %s234_s10 = sld [smem:[#allocation7]]  ;;  %s605_s18 = sld [smem:[#allocation7 + $0x2]] }
  0x5f   : > { %s607_s19 = sld [smem:[#allocation7 + $0x3]]  ;;  %s1090_s22 = sld [smem:[#allocation8 + $0x1]] }
  0x60   : > { %s610_s27 = sld [smem:[#allocation7 + $0x80]]  ;;  %s611_s30 = sld [smem:[#allocation7 + $0x81]] }
  0x61   : > { %s1092_s7 = sld [smem:[#allocation7 + $0x82]]  ;;  %s1096_s8 = sld [smem:[#allocation7 + $0x83]] }
  0x62   : > { %s1098_s9 = sld [smem:[#allocation8 + $0x2]]  ;;  %s1100_s20 = sld [smem:[#allocation7 + $0x100]] }
  0x63   : > { %s1102_s21 = sld [smem:[#allocation7 + $0x101]]  ;;  %v237_v2 = vstv %s233_s24  ;;  %v240_v3 = vstv %s603_s11  ;;  %s1104_s4 = sld [smem:[#allocation7 + $0x102]] }
  0x64   : > { %v235_v1 = vstv %s234_s10  ;;  %v241_v5 = vmul.f32 %v240_v3, %v1094_v0  ;;  %v248_v6 = vstv %s605_s18  ;;  %s1108_s5 = sld [smem:[#allocation7 + $0x103]]  ;;  %s1113_s24 = sld [smem:[#allocation7 + $0x180]] }
  0x65   : > { %v236_v4 = vmul.f32 %v235_v1, %v1094_v0  ;;  %v256_v7 = vstv %s607_s19  ;;  %v249_v8 = vmul.f32 %v248_v6, %v1094_v0  ;;  %v297_v11 = vstv %s1090_s22  ;;  %s1116_s10 = sld [smem:[#allocation8 + $0x3]]  ;;  %s1120_s11 = sld [smem:[#allocation7 + $0x181]] }
  0x66   : > { %v257_v9 = vmul.f32 %v256_v7, %v1094_v0  ;;  %v295_v10 = vstv %s610_s27  ;;  %v604_v13 = vrot.slane %v241_v5, 9  ;;  %v300_v15 = vstv %s611_s30  ;;  %s1124_s18 = sld [smem:[#allocation7 + $0x182]]  ;;  %s1129_s19 = sld [smem:[#allocation7 + $0x183]] }
  0x67   : > { %v238_v12 = vadd.f32 %v237_v2, %v236_v4  ;;  %v296_v14 = vmul.f32 %v295_v10, %v1094_v0  ;;  %v606_v16 = vrot.slane %v249_v8, 10  ;;  %v301_v18 = vmul.f32 %v300_v15, %v1094_v0  ;;  %s229_s22 = scalar_lea.vmem [#allocation9], %s599_s26  ;;  %s642_s26 = sshll.u32 %s883_s15, 7 }
  0x68   : > { %v608_v17 = vrot.slane %v257_v9, 11  ;;  %v308_v19 = vstv %s1092_s7  ;;  %v316_v23 = vstv %s1096_s8  ;;  %v352_v26 = vstv %s1100_s20  ;;  %s481_s27 = sshll.u32 %s229_s22, 4  ;;  %s1167_s8 = scalar_lea.hbm %s1221_s3, %s642_s26  ;;  %s1169_s27 = int_to_ptr.vmem [resolvable:$true] %s481_s27 }
  0x69   : > { %v246_v20 = vadd.f32 %v604_v13, %v238_v12  ;;  %v298_v21 = vadd.f32 %v297_v11, %v296_v14  ;;  %v309_v22 = vmul.f32 %v308_v19, %v1094_v0  ;;  %v612_v24 = vrot.slane %v301_v18, 9  ;;  %s801_s20 = scalar_lea.vmem %s1169_s27, 128  ;;  %s897_s15 = smov [#allocation9]  }
  0x6a   : > { %v317_v25 = vmul.f32 %v316_v23, %v1094_v0  ;;  %v354_v27 = vstv %s1098_s9  ;;  %v353_v30 = vmul.f32 %v352_v26, %v1094_v0  ;;  %v357_v31 = vstv %s1102_s21  ;;  %s465_s9 = scalar_lea.sflag [#allocation4], %s1072_s25  ;;  %p802_p1 = scmp.ne.s32.totalorder %s1169_s27, %s801_s20 }
  0x6b   : > { %v254_v28 = vadd.f32 %v606_v16, %v246_v20  ;;  %v614_v29 = vrot.slane %v309_v22, 10  ;;  %v306_v32 = vadd.f32 %v612_v24, %v298_v21  ;;  %v358_v34 = vmul.f32 %v357_v31, %v1094_v0  ;;  %s805_s21 = sshll.u32 %s897_s15, 4  ;;  %s806_s21 = int_to_ptr.vmem [resolvable:$false] %s805_s21 }
  0x6c   : > { %v616_v33 = vrot.slane %v317_v25, 11  ;;  %v365_v35 = vstv %s1104_s4  ;;  %v355_v37 = vadd.f32 %v354_v27, %v353_v30  ;;  %v373_v39 = vstv %s1108_s5  ;;  %p803_p4 = pnand %p802_p1, %p1023_p8  ;;  %s807_s4 = scalar_lea.vmem %s806_s21, 256 }
  0x6d   : > { %v1135_v36 = vadd.f32 %v608_v17, %v254_v28  ;;  %v366_v38 = vmul.f32 %v365_v35, %v1094_v0  ;;  %v314_v40 = vadd.f32 %v614_v29, %v306_v32  ;;  %v621_v41 = vrot.slane %v358_v34, 9  ;;  %p808_p9 = scmp.lt.s32.totalorder %s1169_s27, %s806_s21  ;;  %p809_p0 = scmp.lt.s32.totalorder %s807_s4, %s801_s20 }
  0x6e   : > { %v374_v42 = vmul.f32 %v373_v39, %v1094_v0  ;;  %v409_v43 = vstv %s1113_s24  ;;  %v411_v47 = vstv %s1116_s10  ;;  %v414_v51 = vstv %s1120_s11  ;;  %p804_p6 = pneg %p803_p4 }
  0x6f   : > { %v263_v44 = vsub.f32 0.0, %v1135_v36  ;;  %v623_v45 = vrot.slane %v366_v38, 10  ;;  %v410_v46 = vmul.f32 %v409_v43, %v1094_v0  ;;  %v322_v48 = vadd.f32 %v616_v33, %v314_v40  ;;  %p810_p11 = por %p809_p0, %p808_p9 }
  0x70   : > { %v363_v49 = vadd.f32 %v621_v41, %v355_v37  ;;  %v625_v50 = vrot.slane %v374_v42, 11  ;;  %v415_v54 = vmul.f32 %v414_v51, %v1094_v0  ;;  %v422_v55 = vstv %s1124_s18 }
  0x71   : > { %v264_v52 = vmul.f32 1.442695, %v263_v44  ;;  %v412_v53 = vadd.f32 %v411_v47, %v410_v46  ;;  %v323_v56 = vsub.f32 0.0, %v322_v48  ;;  %v423_v58 = vmul.f32 %v422_v55, %v1094_v0  ;;  %p811_p5 = pnand %p810_p11, %p804_p6 }
  0x72   : > { %v371_v57 = vadd.f32 %v623_v45, %v363_v49  ;;  %v430_v59 = vstv %s1129_s19  ;;  %v630_v60 = vrot.slane %v415_v54, 9  ;;  %v896_v15 = vmov 1966171168  }
  0x73   : > { %727 = vpow2.f32 %v264_v52  ;;  %v431_v61 = vmul.f32 %v430_v59, %v1094_v0  ;;  %v324_v62 = vmul.f32 1.442695, %v323_v56  ;;  %v632_v1 = vrot.slane %v423_v58, 10 }
  0x74   : > { %v379_v63 = vadd.f32 %v625_v50, %v371_v57  ;;  %v420_v2 = vadd.f32 %v630_v60, %v412_v53  ;;  %v274_v16 = vunpack.c.l.s4 %v896_v15  ;;  %v276_v17 = vlaneseq }
  0x75   : > { %v634_v3 = vrot.slane %v431_v61, 11  ;;  %729 = vpow2.f32 %v324_v62 }
  0x76   : > { %v380_v4 = vsub.f32 0.0, %v379_v63  ;;  %v428_v5 = vadd.f32 %v632_v1, %v420_v2  ;;  %v275_v22 = vunpack.c.0.s8 %v274_v16  ;;  %v277_v23 = vshrl.u32 %v276_v17, 7 }
  0x77   : > { %vm1151_vm0 = vcmp.lt.s32.totalorder %v276_v17, 256 }
  0x78   : > { %v381_v6 = vmul.f32 1.442695, %v380_v4  ;;  %v436_v7 = vadd.f32 %v634_v3, %v428_v5  ;;  %v278_v28 = vsub.s32 %v275_v22, %v277_v23 }
  0x7a   : > { %731 = vpow2.f32 %v381_v6  ;;  %v437_v8 = vsub.f32 0.0, %v436_v7 }
  0x7c   : > { %v438_v10 = vmul.f32 1.442695, %v437_v8 }
  0x7d   : > { %v728_v9 = vpop.eup %727 }
  0x7e   : > { %v266_v11 = vadd.f32 1.0, %v728_v9  ;;  %733 = vpow2.f32 %v438_v10 }
  0x7f   : > { %v730_v12 = vpop.eup %729 }
  0x80   : > { %735 = vrcp.f32 %v266_v11  ;;  %v326_v13 = vadd.f32 1.0, %v730_v12 }
  0x82   : > { %737 = vrcp.f32 %v326_v13 }
  0x84   : > { %v732_v0 = vpop.eup %731 }
  0x85   : > { %v383_v14 = vadd.f32 1.0, %v732_v0 }
  0x87   : > { %739 = vrcp.f32 %v383_v14 }
  0x88   : > { %v734_v18 = vpop.eup %733 }
  0x89   : > { %v440_v20 = vadd.f32 1.0, %v734_v18 }
  0x8a   : > { %v736_v19 = vpop.eup %735 }
  0x8b   : > { %v268_v21 = vmul.f32 %v736_v19, %v266_v11  ;;  %741 = vrcp.f32 %v440_v20 }
  0x8c   : > { %v738_v24 = vpop.eup %737 }
  0x8d   : > { %v269_v25 = vsub.f32 2.0, %v268_v21  ;;  %v328_v26 = vmul.f32 %v738_v24, %v326_v13 }
  0x8f   : > { %v270_v27 = vmul.f32 %v736_v19, %v269_v25  ;;  %v329_v29 = vsub.f32 2.0, %v328_v26 }
  0x91   : > { %v740_v30 = vpop.eup %739  ;;  %v271_v31 = vmul.f32 %v270_v27, %v1135_v36  ;;  %v330_v32 = vmul.f32 %v738_v24, %v329_v29 }
  0x92   : > { %v385_v33 = vmul.f32 %v740_v30, %v383_v14 }
  0x93   : > { %v279_v34 = vrot.slane %v271_v31, %v278_v28  ;;  %v331_v37 = vmul.f32 %v330_v32, %v322_v48 }
  0x94   : > { %v386_v38 = vsub.f32 2.0, %v385_v33 }
  0x95   : > { %v286_v39 = vrot.slane %v279_v34, %v278_v28  ;;  %v742_v40 = vpop.eup %741  ;;  %v339_v41 = vrot.slane %v331_v37, %v278_v28 }
  0x96   : > { %v387_v42 = vmul.f32 %v740_v30, %v386_v38  ;;  %v442_v36 = vmul.f32 %v742_v40, %v440_v20 }
  0x97   : > { %292 = vst.msk [vmem:[%s229_s22] ss:$4 sm:$0x3] %vm1151_vm0, %v286_v39  ;;  %v346_v43 = vrot.slane %v339_v41, %v278_v28 }
  0x98   : > { %v388_v44 = vmul.f32 %v387_v42, %v379_v63  ;;  %v443_v45 = vsub.f32 2.0, %v442_v36 }
  0x99   : > { %617 = vst.msk [vmem:[%s229_s22 + $0x1] ss:$4 sm:$0x3] %vm1151_vm0, %v346_v43 }
  0x9a   : > { %v396_v46 = vrot.slane %v388_v44, %v278_v28  ;;  %v444_v47 = vmul.f32 %v742_v40, %v443_v45 }
  0x9c   : > { %v403_v48 = vrot.slane %v396_v46, %v278_v28  ;;  %v445_v49 = vmul.f32 %v444_v47, %v436_v7 }
  0x9e   : > { %626 = vst.msk [vmem:[%s229_s22 + $0x2] ss:$4 sm:$0x3] %vm1151_vm0, %v403_v48  ;;  %v453_v50 = vrot.slane %v445_v49, %v278_v28 }
  0xa0   : > { %v460_v51 = vrot.slane %v453_v50, %v278_v28 }
  0xa2   : > { %635 = vst.msk [vmem:[%s229_s22 + $0x3] ss:$4 sm:$0x3] %vm1151_vm0, %v460_v51 }
  0xa3   : > { %814 = shalt.err (!%p811_p5)
}
  0xa4   : > { %s815_s25 = scalar_lea.hbm %s1167_s8, 128  ;;  %s819_s10 = scalar_lea.hbm %s1221_s3, 256 }
  0xa5   : > { %p816_p10 = scmp.ne.s32.totalorder %s1167_s8, %s815_s25  ;;  %p820_p7 = scmp.lt.u32.totalorder %s1167_s8, %s1221_s3 }
  0xa6   : > { %p821_p12 = scmp.lt.u32.totalorder %s819_s10, %s815_s25  ;;  %p823_p1 = scmp.lt.u32.totalorder %s815_s25, %s1167_s8 }
  0xa7   : > { %p817_p13 = pnand %p816_p10, %p1023_p8 }
  0xa8   : > { %p822_p2 = por %p821_p12, %p820_p7 }
  0xa9   : > { %p818_p3 = pneg %p817_p13 }
  0xaa   : > { %p824_p4 = por %p823_p1, %p822_p2 }
  0xac   : > { %p825_p6 = pnand %p824_p4, %p818_p3 }
  0xae   : > { %828 = shalt.err (!%p825_p6)
}
  0xaf   : > { %653 = dma.vmem_to_hbm [thread:$0]  (%p1023_p8), %s1169_s27, 128, %s1167_s8, %s465_s9  }
  0xb0 PF: > { %s493_s19 = sand.u32 1, %s871_s12   ;;  %p1240_p9 = scmp.ne.s32.totalorder %s1229_s23, 0 }
  0xb1   : > { %p1241_p0 = scmp.ge.s32.totalorder %s891_s17, 2  ;;  %s494_s22 = scalar_lea.sflag [#allocation4], %s493_s19 }
  0xb3   : > { %p667_p11 = pnand %p1241_p0, %p1240_p9 }
  0xb5   : > { %866 = dma.done.wait (!%p667_p11), %s494_s22, 128  }
  0xb6   : > { %868 = vsyncadd (!%p667_p11), %s494_s22, 4294967168  ;;  %s21_s17 = sadd.s32 1, %s891_s17   ;;  %s1242_s12 = smov %s875_s13 }
  0xb7   : > { %p18_p5 = scmp.ge.s32.totalorder %s21_s17, 4   ;;  %s1243_s13 = smov %s879_s14 }
  0xb8   : > { %s1244_s14 = smov %s1029_s6  ;;  %s1245_s15 = smov %s887_s16 }
  0xb9   : > { %s1246_s16 = smov %s1248_s29  ;;  %20 = sbr.rel (!%p18_p5) target bundleno = 8 (0x8), region = 90 }
  0xc0   :  { %499 = vsyncpa [#allocation3], 1 }
  0xc1   :  { %501 = vsyncpa [#allocation3 + $0x1], 1 }
  0xc2   :  { %502 = vsyncpa [#allocation4], 1 }
  0xc3   :  { %504 = vsyncpa [#allocation4 + $0x1], 1 }
  0xc4   :  { %505 = vsyncpa [#allocation5], 1 }
  0xc5   :  { %507 = vsyncpa [#allocation5 + $0x1], 1 }
  0xc6   :  { %508 = vsyncpa [#allocation6], 1 }
  0xc7   :  { %510 = vsyncpa [#allocation6 + $0x1], 1 }

</bundles_post_ra>
